<compile_context>
chip_gen: v7x
topology: tpu7x:2x2x1
jax: 0.10.0
libtpu: 0.0.40
codegen_flags: <defaults>
</compile_context>

<pallas_src>
import jax
import jax.numpy as jnp
from jax import lax
from jax.experimental import pallas as pl
from jax.experimental.pallas import tpu as pltpu


def _round_up(x, m):
    return (x + m - 1) // m * m


def _pad_to(arr, target_shape):
    pads = [(0, t - s) for s, t in zip(arr.shape, target_shape)]
    if all(p == (0, 0) for p in pads):
        return arr
    return jnp.pad(arr, pads)


def _lora_kernel(x_ref, w_ref, xa_ref, b_ref, o_ref, acc_ref):
    # x_ref:  (tm, tk)      input tile
    # w_ref:  (tn, tk)      W tile in (out, in) layout -> contract on last dim
    # xa_ref: (tm, r)       precomputed scaling * (x @ A.T), resident across K
    # b_ref:  (tn, r)       B tile in (out, r) layout, resident across K
    # acc_ref:(tm, tn) f32  dense-path accumulator (carried over K)
    k = pl.program_id(2)
    nk = pl.num_programs(2)

    @pl.when(k == 0)
    def _():
        acc_ref[...] = jnp.zeros_like(acc_ref)

    nt_dims = (((1,), (1,)), ((), ()))  # contract last dims of both operands

    # Main path: (tm, tk) . (tn, tk)^T -> (tm, tn), f32 accumulate on MXU.
    acc_ref[...] += lax.dot_general(
        x_ref[...], w_ref[...], nt_dims, preferred_element_type=jnp.float32)

    @pl.when(k == nk - 1)
    def _():
        # Rank-r epilogue: (tm, r) . (tn, r)^T -> (tm, tn). Negligible FLOPs.
        ab = lax.dot_general(
            xa_ref[...], b_ref[...], nt_dims, preferred_element_type=jnp.float32)
        o_ref[...] = (acc_ref[...] + ab).astype(o_ref.dtype)


def lora_linear(x, weight, A, B, *, alpha=16, tm=512, tn=512, tk=1024):
    """x: (M, in); weight: (out, in); A: (r, in); B: (out, r)."""
    M, IN = x.shape
    OUT, IN_w = weight.shape
    r = A.shape[0]
    assert IN_w == IN and A.shape[1] == IN and B.shape == (OUT, r)

    scaling = alpha // r  # matches the PyTorch module (integer floor division)

    # LoRA-A path hoisted out of the kernel: one tiny (M, in) x (in, r) matmul,
    # scaling folded in. Accumulate in f32, hand the kernel x.dtype.
    xa = lax.dot_general(
        x, A, (((1,), (1,)), ((), ())), preferred_element_type=jnp.float32)
    xa = (xa * float(scaling)).astype(x.dtype)  # (M, r)

    # Clamp tile sizes to (padded) problem size; keep MXU/lane alignment.
    # bf16 packs 16 rows per sublane tile; f32 packs 8.
    row_align = 16 if x.dtype == jnp.bfloat16 else 8
    tm = min(tm, _round_up(M, row_align))
    tn = min(tn, _round_up(OUT, 128))
    tk = min(tk, _round_up(IN, 128))

    M_p = _round_up(M, tm)
    OUT_p = _round_up(OUT, tn)
    IN_p = _round_up(IN, tk)

    # v7x megacore: with a single M block, make sure the parallel N axis has
    # >= 2 blocks so both TensorCores get work (no-op on v5e/v6e).
    if M_p // tm == 1 and OUT_p == tn and OUT_p % 256 == 0:
        tn = OUT_p // 2

    # Zero-padding is exact: padded rows/cols contribute 0 and are sliced off.
    x_p = _pad_to(x, (M_p, IN_p))
    w_p = _pad_to(weight, (OUT_p, IN_p))
    xa_p = _pad_to(xa, (M_p, r))
    b_p = _pad_to(B, (OUT_p, r))

    grid = (M_p // tm, OUT_p // tn, IN_p // tk)
    grid_m, grid_n, grid_k = grid

    in_sz = jnp.dtype(x.dtype).itemsize
    w_sz = jnp.dtype(weight.dtype).itemsize
    b_sz = jnp.dtype(B.dtype).itemsize

    # Double-buffered VMEM footprint; leave headroom, cap at 48 MiB (safe on
    # v7x's 64 MiB physical VMEM, plenty under v5e/v6e's 128 MiB).
    vmem_needed = (
        2 * tm * tk * in_sz      # x tiles
        + 2 * tn * tk * w_sz     # W tiles
        + 2 * tm * r * in_sz     # xa tiles
        + 2 * tn * r * b_sz      # B tiles
        + 2 * tm * tn * in_sz    # output tiles
        + tm * tn * 4            # f32 accumulator
    )
    vmem_limit = min(max(32 * 1024 * 1024, int(1.25 * vmem_needed)),
                     48 * 1024 * 1024)

    # Cost estimate with actual re-stream traffic (W re-read per M block,
    # x re-read per N block).
    flops = 2 * M_p * IN_p * OUT_p + 2 * M_p * r * OUT_p
    bytes_accessed = (
        grid_n * M_p * IN_p * in_sz
        + grid_m * OUT_p * IN_p * w_sz
        + grid_n * M_p * r * in_sz
        + grid_m * OUT_p * r * b_sz
        + M_p * OUT_p * in_sz
    )

    out = pl.pallas_call(
        _lora_kernel,
        out_shape=jax.ShapeDtypeStruct((M_p, OUT_p), x.dtype),
        grid_spec=pltpu.PrefetchScalarGridSpec(
            num_scalar_prefetch=0,
            grid=grid,
            in_specs=[
                pl.BlockSpec((tm, tk), lambda i, j, k: (i, k)),  # x
                pl.BlockSpec((tn, tk), lambda i, j, k: (j, k)),  # W (out, in)
                pl.BlockSpec((tm, r), lambda i, j, k: (i, 0)),   # xa, resident across j/k
                pl.BlockSpec((tn, r), lambda i, j, k: (j, 0)),   # B (out, r), resident across k
            ],
            out_specs=pl.BlockSpec((tm, tn), lambda i, j, k: (i, j)),
            scratch_shapes=[
                pltpu.VMEM((tm, tn), jnp.float32),  # dense accumulator
            ],
        ),
        compiler_params=pltpu.CompilerParams(
            dimension_semantics=("parallel", "parallel", "arbitrary"),
            vmem_limit_bytes=vmem_limit,
        ),
        cost_estimate=pl.CostEstimate(
            flops=flops, transcendentals=0, bytes_accessed=bytes_accessed),
    )(x_p, w_p, xa_p, b_p)

    if (M_p, OUT_p) != (M, OUT):
        out = out[:M, :OUT]
    return out


if __name__ == "__main__":
    key = jax.random.PRNGKey(0)
    k_x, k_w, k_a, k_b = jax.random.split(key, 4)

    # Small shapes consistent with the module: batch=8, in=32, out=64, r=4.
    M, IN, OUT, R, ALPHA = 8, 32, 64, 4, 16

    x = jax.random.normal(k_x, (M, IN), dtype=jnp.float32)
    weight = jax.random.normal(k_w, (OUT, IN), dtype=jnp.float32)
    A = jax.random.normal(k_a, (R, IN), dtype=jnp.float32)
    B = jax.random.normal(k_b, (OUT, R), dtype=jnp.float32)

    y = lora_linear(x, weight, A, B, alpha=ALPHA)
    y = jax.block_until_ready(y)

    # Pure-JAX reference check of the forward semantics.
    scaling = ALPHA // R
    y_ref = x @ weight.T + scaling * ((x @ A.T) @ B.T)
    assert y.shape == (M, OUT)
    assert jnp.allclose(y, y_ref, atol=1e-3, rtol=1e-3), float(
        jnp.max(jnp.abs(y - y_ref)))

    print("KERNEL_OK")
</pallas_src>

<mosaic_0001>
module attributes {stable_mosaic.version = 11 : i64} {
  func.func @_lora_kernel(%arg0: i32, %arg1: i32, %arg2: i32, %arg3: memref<8x128xf32, #tpu.memory_space<vmem>>, %arg4: memref<128x128xf32, #tpu.memory_space<vmem>>, %arg5: memref<8x4xf32, #tpu.memory_space<vmem>>, %arg6: memref<128x4xf32, #tpu.memory_space<vmem>>, %arg7: memref<8x128xf32, #tpu.memory_space<vmem>>, %arg8: memref<8x128xf32, #tpu.memory_space<vmem>>) attributes {dimension_semantics = [#tpu.dimension_semantics<parallel>, #tpu.dimension_semantics<parallel>, #tpu.dimension_semantics<arbitrary>], iteration_bounds = array<i64: 1, 1, 1>, scalar_prefetch = 0 : i64, scratch_operands = 1 : i64, tpu.core_type = #tpu.core_type<tc>, window_params = [{transform_indices = @transform_0, window_bounds = array<i64: 8, 128>}, {transform_indices = @transform_1, window_bounds = array<i64: 128, 128>}, {transform_indices = @transform_2, window_bounds = array<i64: 8, 4>}, {transform_indices = @transform_3, window_bounds = array<i64: 128, 4>}, {transform_indices = @transform_4, window_bounds = array<i64: 8, 128>}]} {
    %c0_i32 = arith.constant 0 : i32
    %0 = arith.cmpi eq, %arg2, %c0_i32 : i32
    %1 = arith.extui %0 : i1 to i32
    %c0_i32_0 = arith.constant 0 : i32
    %2 = arith.cmpi ne, %1, %c0_i32_0 : i32
    scf.if %2 {
      %cst_10 = arith.constant 0.000000e+00 : f32
      %12 = vector.broadcast %cst_10 : f32 to vector<8x128xf32>
      %c0_11 = arith.constant 0 : index
      %c0_12 = arith.constant 0 : index
      %13 = vector.load %arg8[%c0_11, %c0_12] : memref<8x128xf32, #tpu.memory_space<vmem>>, vector<8x128xf32>
      tpu.vector_store %arg8[%c0_11, %c0_12], %12 {strides = array<i32>} : memref<8x128xf32, #tpu.memory_space<vmem>>, vector<8x128xf32>,
    } else {
    }
    %c0 = arith.constant 0 : index
    %c0_1 = arith.constant 0 : index
    %3 = vector.load %arg8[%c0, %c0_1] : memref<8x128xf32, #tpu.memory_space<vmem>>, vector<8x128xf32>
    %c0_2 = arith.constant 0 : index
    %c0_3 = arith.constant 0 : index
    %4 = vector.load %arg3[%c0_2, %c0_3] : memref<8x128xf32, #tpu.memory_space<vmem>>, vector<8x128xf32>
    %c0_4 = arith.constant 0 : index
    %c0_5 = arith.constant 0 : index
    %5 = vector.load %arg4[%c0_4, %c0_5] : memref<128x128xf32, #tpu.memory_space<vmem>>, vector<128x128xf32>
    %cst = arith.constant dense<0.000000e+00> : vector<8x128xf32>
    %6 = tpu.matmul %4, %5, %cst {dimension_numbers = #tpu.dot_dimension_numbers<[1], [1], [0], [0], [0, 0, 1, 0], [], []>} : vector<8x128xf32>, vector<128x128xf32>, vector<8x128xf32> -> vector<8x128xf32>
    %7 = arith.addf %3, %6 : vector<8x128xf32>
    %c0_6 = arith.constant 0 : index
    %c0_7 = arith.constant 0 : index
    %8 = vector.load %arg8[%c0_6, %c0_7] : memref<8x128xf32, #tpu.memory_space<vmem>>, vector<8x128xf32>
    tpu.vector_store %arg8[%c0_6, %c0_7], %7 {strides = array<i32>} : memref<8x128xf32, #tpu.memory_space<vmem>>, vector<8x128xf32>,
    %c0_i32_8 = arith.constant 0 : i32
    %9 = arith.cmpi eq, %arg2, %c0_i32_8 : i32
    %10 = arith.extui %9 : i1 to i32
    %c0_i32_9 = arith.constant 0 : i32
    %11 = arith.cmpi ne, %10, %c0_i32_9 : i32
    scf.if %11 {
      %c0_10 = arith.constant 0 : index
      %c0_11 = arith.constant 0 : index
      %12 = vector.load %arg5[%c0_10, %c0_11] : memref<8x4xf32, #tpu.memory_space<vmem>>, vector<8x4xf32>
      %c0_12 = arith.constant 0 : index
      %c0_13 = arith.constant 0 : index
      %13 = vector.load %arg6[%c0_12, %c0_13] : memref<128x4xf32, #tpu.memory_space<vmem>>, vector<128x4xf32>
      %cst_14 = arith.constant dense<0.000000e+00> : vector<8x128xf32>
      %14 = tpu.matmul %12, %13, %cst_14 {dimension_numbers = #tpu.dot_dimension_numbers<[1], [1], [0], [0], [0, 0, 1, 0], [], []>} : vector<8x4xf32>, vector<128x4xf32>, vector<8x128xf32> -> vector<8x128xf32>
      %c0_15 = arith.constant 0 : index
      %c0_16 = arith.constant 0 : index
      %15 = vector.load %arg8[%c0_15, %c0_16] : memref<8x128xf32, #tpu.memory_space<vmem>>, vector<8x128xf32>
      %16 = arith.addf %15, %14 : vector<8x128xf32>
      %c0_17 = arith.constant 0 : index
      %c0_18 = arith.constant 0 : index
      %17 = vector.load %arg7[%c0_17, %c0_18] : memref<8x128xf32, #tpu.memory_space<vmem>>, vector<8x128xf32>
      tpu.vector_store %arg7[%c0_17, %c0_18], %16 {strides = array<i32>} : memref<8x128xf32, #tpu.memory_space<vmem>>, vector<8x128xf32>,
    } else {
    }
    return
  }
  func.func @transform_0(%arg0: i32, %arg1: i32, %arg2: i32) -> (i32, i32) {
    %c0_i32 = arith.constant 0 : i32
    return %arg0, %arg2 : i32, i32
  }
  func.func @transform_1(%arg0: i32, %arg1: i32, %arg2: i32) -> (i32, i32) {
    %c0_i32 = arith.constant 0 : i32
    return %arg1, %arg2 : i32, i32
  }
  func.func @transform_2(%arg0: i32, %arg1: i32, %arg2: i32) -> (i32, i32) {
    %c0_i32 = arith.constant 0 : i32
    %c0_i32_0 = arith.constant 0 : i32
    return %arg0, %c0_i32 : i32, i32
  }
  func.func @transform_3(%arg0: i32, %arg1: i32, %arg2: i32) -> (i32, i32) {
    %c0_i32 = arith.constant 0 : i32
    %c0_i32_0 = arith.constant 0 : i32
    return %arg1, %c0_i32 : i32, i32
  }
  func.func @transform_4(%arg0: i32, %arg1: i32, %arg2: i32) -> (i32, i32) {
    %c0_i32 = arith.constant 0 : i32
    return %arg0, %arg1 : i32, i32
  }
}

</mosaic_0001>

<bundles_post_ra>
// kernel: tpu_custom_call.1
= control target key start
LH: loop header
LB: loop body
LE: loop exit
PB: predicated region body
PF: predicated region fallthrough
CT: control target
= control target key end

     0   :  { %vm133_vm0 = vcmask 31744   ;;  %v478_v3 = vmov 0.0|0.0   ;;  %vm479_vm2 = vmmov 0   ;;  %v480_v8 = vmov 0.0   ;;  %s660_s0 = inlined_call_operand.vmem [shape: f32[8,128], index: 0, kind: input, shape index: {}]   ;;  %s661_s1 = inlined_call_operand.vmem [shape: f32[128,128], index: 1, kind: input, shape index: {}]   ;;  %s662_s2 = inlined_call_operand.vmem [shape: f32[8,4], index: 2, kind: input, shape index: {}]   ;;  %s663_s3 = inlined_call_operand.vmem [shape: f32[128,4], index: 3, kind: input, shape index: {}]   ;;  %s664_s4 = inlined_call_operand.hbm [shape: f32[8,128], index: 4, kind: output, shape index: {}]  }
   0x1   :  { %v25_v0 = vld [vmem:[%s661_s1] sm:$0xff]  ;;  %v26_v1 = vld [vmem:[%s661_s1 + $0x8] sm:$0xff]  ;;  %393 = vmatprep.subr.bf16.mxu1 %v478_v3  ;;  %417 = vmatprep.subr.bf16.mxu0 %v478_v3  ;;  %vm523_vm1 = vmpackc.low %vm133_vm0, %vm133_vm0 }
   0x2   :  { %v117_v2 = vld [vmem:[%s663_s3] sm:$0xff]  ;;  %v394_v4 = vpack.c.bf16 %v26_v1, %v25_v0  ;;  %v118_v5 = vld [vmem:[%s663_s3 + $0x8] sm:$0xff]  ;;  %355 = vmatprep.mubr.msk.f32.mxu1 %vm479_vm2, %v480_v8  ;;  %390 = vmatprep.mubr.msk.f32.mxu0 %vm479_vm2, %v480_v8  ;;  %v27_v9 = vld [vmem:[%s661_s1 + $0x10] sm:$0xff] }
   0x3   :  { %v418_v7 = vpack.c.bf16 %v118_v5, %v117_v2  ;;  %v28_v10 = vld [vmem:[%s661_s1 + $0x18] sm:$0xff]  ;;  %v119_v11 = vld [vmem:[%s663_s3 + $0x10] sm:$0xff] }
   0x4   :  { %395 = vmatpush3.bf16.xpose.msra.mxu1 %v394_v4  ;;  %v120_v12 = vld [vmem:[%s663_s3 + $0x18] sm:$0xff]  ;;  %v397_v13 = vpack.c.bf16 %v28_v10, %v27_v9 }
   0x5   :  { %420 = vmatpush3.bf16.xpose.msk.msra.mxu0 %vm523_vm1, %v418_v7  ;;  %396 = vmatprep.subr.bf16.mxu1 %v478_v3  ;;  %v422_v14 = vpack.c.bf16 %v120_v12, %v119_v11 }
   0x6   :  { %421 = vmatprep.subr.bf16.mxu0 %v478_v3 }
   0xc   :  { %398 = vmatpush3.bf16.xpose.msra.mxu1 %v397_v13 }
   0xd   :  { %9 = vsyncpa [#allocation4], 0  ;;  %424 = vmatpush3.bf16.xpose.msk.msra.mxu0 %vm523_vm1, %v422_v14  ;;  %399 = vmatprep.subr.bf16.mxu1 %v478_v3  ;;  %v29_v15 = vld [vmem:[%s661_s1 + $0x20] sm:$0xff]  ;;  %v30_v16 = vld [vmem:[%s661_s1 + $0x28] sm:$0xff]  ;;  %s481_s30 = smov [#allocation3]  }
   0xe   :  { %425 = vmatprep.subr.bf16.mxu0 %v478_v3  ;;  %v121_v17 = vld [vmem:[%s663_s3 + $0x20] sm:$0xff]  ;;  %v122_v18 = vld [vmem:[%s663_s3 + $0x28] sm:$0xff]  ;;  %v400_v19 = vpack.c.bf16 %v30_v16, %v29_v15  ;;  %v31_v21 = vld [vmem:[%s661_s1 + $0x30] sm:$0xff]  ;;  %s264_s5 = sshll.u32 %s481_s30, 4  ;;  %s265_s5 = int_to_ptr.vmem [resolvable:$true] %s264_s5 }
   0xf   :  { %v426_v20 = vpack.c.bf16 %v122_v18, %v121_v17  ;;  %v32_v22 = vld [vmem:[%s661_s1 + $0x38] sm:$0xff]  ;;  %v123_v23 = vld [vmem:[%s663_s3 + $0x30] sm:$0xff]  ;;  %v33_v27 = vld [vmem:[%s661_s1 + $0x40] sm:$0xff]  ;;  %p459_p1 = scmp.lt.s32.totalorder %s265_s5, %s265_s5 }
  0x10   :  { %v124_v24 = vld [vmem:[%s663_s3 + $0x38] sm:$0xff]  ;;  %v403_v25 = vpack.c.bf16 %v32_v22, %v31_v21  ;;  %v34_v28 = vld [vmem:[%s661_s1 + $0x48] sm:$0xff]  ;;  %v125_v29 = vld [vmem:[%s663_s3 + $0x40] sm:$0xff] }
  0x11   :  { %v430_v26 = vpack.c.bf16 %v124_v24, %v123_v23  ;;  %v126_v30 = vld [vmem:[%s663_s3 + $0x48] sm:$0xff]  ;;  %v406_v31 = vpack.c.bf16 %v34_v28, %v33_v27  ;;  %v35_v33 = vld [vmem:[%s661_s1 + $0x50] sm:$0xff]  ;;  %v36_v34 = vld [vmem:[%s661_s1 + $0x58] sm:$0xff] }
  0x12   :  { %v434_v32 = vpack.c.bf16 %v126_v30, %v125_v29  ;;  %v127_v35 = vld [vmem:[%s663_s3 + $0x50] sm:$0xff]  ;;  %v128_v36 = vld [vmem:[%s663_s3 + $0x58] sm:$0xff]  ;;  %v409_v37 = vpack.c.bf16 %v36_v34, %v35_v33  ;;  %v37_v39 = vld [vmem:[%s661_s1 + $0x60] sm:$0xff] }
  0x13   :  { %v438_v38 = vpack.c.bf16 %v128_v36, %v127_v35  ;;  %v38_v40 = vld [vmem:[%s661_s1 + $0x68] sm:$0xff]  ;;  %v129_v41 = vld [vmem:[%s663_s3 + $0x60] sm:$0xff]  ;;  %v39_v45 = vld [vmem:[%s661_s1 + $0x70] sm:$0xff] }
  0x14   :  { %401 = vmatpush3.bf16.xpose.msra.mxu1 %v400_v19  ;;  %v130_v42 = vld [vmem:[%s663_s3 + $0x68] sm:$0xff]  ;;  %v412_v43 = vpack.c.bf16 %v38_v40, %v37_v39  ;;  %v40_v46 = vld [vmem:[%s661_s1 + $0x78] sm:$0xff]  ;;  %v131_v47 = vld [vmem:[%s663_s3 + $0x70] sm:$0xff] }
  0x15   :  { %428 = vmatpush3.bf16.xpose.msk.msra.mxu0 %vm523_vm1, %v426_v20  ;;  %402 = vmatprep.subr.bf16.mxu1 %v478_v3  ;;  %v442_v44 = vpack.c.bf16 %v130_v42, %v129_v41  ;;  %v132_v48 = vld [vmem:[%s663_s3 + $0x78] sm:$0xff]  ;;  %v415_v49 = vpack.c.bf16 %v40_v46, %v39_v45  ;;  %v24_v51 = vld [vmem:[%s660_s0] sm:$0xff]  ;;  %s454_s3 = scalar_lea.vmem %s265_s5, 128 }
  0x16   :  { %429 = vmatprep.subr.bf16.mxu0 %v478_v3  ;;  %v446_v50 = vpack.c.bf16 %v132_v48, %v131_v47  ;;  %v116_v52 = vld [vmem:[%s662_s2] sm:$0xff]  ;;  %p455_p0 = scmp.ne.s32.totalorder %s265_s5, %s454_s3  ;;  %p460_p2 = scmp.lt.s32.totalorder %s454_s3, %s454_s3 }
  0x18   :  { %p461_p3 = por %p460_p2, %p459_p1 }
  0x1a   :  { %p462_p4 = pnand %p461_p3, %p455_p0 }
  0x1c   :  { %404 = vmatpush3.bf16.xpose.msra.mxu1 %v403_v25 }
  0x1d   :  { %432 = vmatpush3.bf16.xpose.msk.msra.mxu0 %vm523_vm1, %v430_v26  ;;  %405 = vmatprep.subr.bf16.mxu1 %v478_v3 }
  0x1e   :  { %433 = vmatprep.subr.bf16.mxu0 %v478_v3 }
  0x24   :  { %407 = vmatpush3.bf16.xpose.msra.mxu1 %v406_v31 }
  0x25   :  { %436 = vmatpush3.bf16.xpose.msk.msra.mxu0 %vm523_vm1, %v434_v32  ;;  %408 = vmatprep.subr.bf16.mxu1 %v478_v3 }
  0x26   :  { %437 = vmatprep.subr.bf16.mxu0 %v478_v3 }
  0x2c   :  { %410 = vmatpush3.bf16.xpose.msra.mxu1 %v409_v37 }
  0x2d   :  { %440 = vmatpush3.bf16.xpose.msk.msra.mxu0 %vm523_vm1, %v438_v38  ;;  %411 = vmatprep.subr.bf16.mxu1 %v478_v3 }
  0x2e   :  { %441 = vmatprep.subr.bf16.mxu0 %v478_v3 }
  0x34   :  { %413 = vmatpush3.bf16.xpose.msra.mxu1 %v412_v43 }
  0x35   :  { %444 = vmatpush3.bf16.xpose.msk.msra.mxu0 %vm523_vm1, %v442_v44  ;;  %414 = vmatprep.subr.bf16.mxu1 %v478_v3 }
  0x36   :  { %445 = vmatprep.subr.bf16.mxu0 %v478_v3 }
  0x3c   :  { %416 = vmatpush3.bf16.xpose.msra.mxu1 %v415_v49 }
  0x3d   :  { %448 = vmatpush3.bf16.xpose.msk.msra.mxu0 %vm523_vm1, %v446_v50 }
  0x43   :  { %356 = vmatmul.mubr.f32.vlgmr.msra.gmra.mrb[0].mxu1 %v24_v51 }
  0x44   :  { %391 = vmatmul.mubr.msk.f32.vlgmr.msra.gmra.mrb[0].mxu0 %vm133_vm0, %v116_v52 }
 0x116   :  { %v107_v53 = vpop.f32.mrb[0].mxu1 }
 0x117   :  { %v251_v54 = vpop.f32.mrb[0].mxu0  ;;  %v357_v55 = vpop.f32.mrb[1].mxu1 }
 0x118   :  { %v256_v56 = vadd.f32 %v251_v54, %v107_v53  ;;  %v392_v57 = vpop.f32.mrb[1].mxu0 }
 0x11a   :  { %257 = vst [vmem:[#allocation3] sm:$0xff] %v256_v56 }
 0x11b   :  { %465 = shalt.err (!%p462_p4)
}
 0x11c   :  { %s466_s6 = scalar_lea.hbm %s664_s4, 128 }
 0x11d   :  { %p467_p5 = scmp.ne.s32.totalorder %s664_s4, %s466_s6  ;;  %p470_p6 = scmp.lt.u32.totalorder %s466_s6, %s664_s4 }
 0x11f   :  { %p472_p7 = pnand %p470_p6, %p467_p5 }
 0x121   :  { %475 = shalt.err (!%p472_p7)
}
 0x122   :  { %267 = dma.vmem_to_hbm [thread:$0]  %s265_s5, 128, %s664_s4, [#allocation4]  }
 0x123   :  { %476 = dma.done.wait [#allocation4], 128  }
 0x124   :  { %477 = vsyncadd [#allocation4], 4294967168 }
 0x125   :  { %271 = vsyncpa [#allocation4], 1 }

</bundles_post_ra>
